<compile_context>
chip_gen: v7x
topology: tpu7x:2x2x1
jax: 0.10.0
libtpu: 0.0.40
codegen_flags: <defaults>
</compile_context>

<pallas_src>
import jax
import jax.numpy as jnp
from jax.experimental import pallas as pl
from jax.experimental.pallas import tpu as pltpu


def _round_up(x, m):
    return ((x + m - 1) // m) * m


def vbpr_kernel(scal_ref, u_ref, i_ref, uv_ref, uc_ref, vis_ref, cat_ref,
                wv_ref, wc_ref, bv_ref, bc_ref, o_ref):
    """One batch tile of the VBPR prediction (bias term added in the epilogue).

    Block shapes (TB = batch tile, E = embedding, Vp = visual projection size,
    Vs = visual feature size, C = category size):
      scal_ref : (2,) SMEM           -> [1 - sigmoid(alpha), sigmoid(alpha)]
      u_ref, i_ref, uc_ref : (TB, E)
      uv_ref   : (TB, Vp)
      vis_ref  : (TB, Vs)
      cat_ref  : (TB, C)
      wv_ref   : (Vs, Vp) pinned     wc_ref : (C, E) pinned
      bv_ref   : (1, Vp)  pinned     bc_ref : (1, E) pinned
      o_ref    : (TB, 1)
    """
    one_m_a = scal_ref[0]
    a = scal_ref[1]

    # I_v = vis @ Wv^T + bv ; I_c = C_emb @ Wc^T + bc  (f32 accumulation on MXU).
    i_v = jnp.dot(vis_ref[...], wv_ref[...],
                  preferred_element_type=jnp.float32) + bv_ref[...]      # (TB, Vp)
    i_c = jnp.dot(cat_ref[...], wc_ref[...],
                  preferred_element_type=jnp.float32) + bc_ref[...]      # (TB, E)

    # content = visual_pred + category_pred (cross-lane reductions -> XLU slot,
    # free under the DMA-bound roofline; intentionally NOT turned into matmuls).
    content = (jnp.sum(uv_ref[...].astype(jnp.float32) * i_v,
                       axis=-1, keepdims=True)
               + jnp.sum(uc_ref[...].astype(jnp.float32) * i_c,
                         axis=-1, keepdims=True))                        # (TB, 1)

    # Matrix-factorization term: sum(U * I, dim=1).
    mf = jnp.sum(u_ref[...].astype(jnp.float32) * i_ref[...].astype(jnp.float32),
                 axis=-1, keepdims=True)                                 # (TB, 1)

    # (1-a)*mf + a*content ; (1-a)*(b_u + b_i + mean) is added outside the
    # kernel.  dropout(p=0) == identity.
    o_ref[...] = one_m_a * mf + a * content


def vbpr_forward(params, u_id, i_id, *, tile_b=512,
                 matmul_dtype=jnp.bfloat16, emb_dtype=jnp.bfloat16):
    """Gather glue (XLA) + one batch-tiled pallas_call for the compute.

    matmul_dtype : dtype of the MXU operands (visual/category features, Wv/Wc).
    emb_dtype    : dtype of the elementwise operands (U, I, U_v, U_c).
    bf16 defaults are recommended on every generation (the kernel is purely
    HBM-bandwidth bound and accumulates in f32); pass f32 for exactness checks.
    """
    B = u_id.shape[0]
    E = params["user_emb"].shape[1]
    Vp = params["user_visual_emb"].shape[1]
    Vs = params["visual_feature_table"].shape[1]
    C = params["category_emb"].shape[1]

    ebytes = jnp.dtype(emb_dtype).itemsize
    mbytes = jnp.dtype(matmul_dtype).itemsize
    weight_bytes = (Vs * Vp + C * E) * mbytes + (Vp + E) * 4

    def working_set(tb):
        # double-buffered input + output tiles, (possibly) double-buffered
        # pinned weights, plus slack for internal scratch.
        per_tile = tb * ((3 * E + Vp) * ebytes + (Vs + C) * mbytes + 4)
        return 2 * per_tile + 2 * weight_bytes + (2 << 20)

    # Generation-aware VMEM cap: leave ~16 MiB headroom for internal scratch,
    # never ask for more than ~100 MiB (v5e/v6e: 128 MiB physical, v7x: 64 MiB).
    try:
        phys_vmem = int(pltpu.get_tpu_info().vmem_capacity_bytes)
    except Exception:
        phys_vmem = 64 << 20                     # conservative (v7x per-TC)
    vmem_cap = max(16 << 20, min(phys_vmem - (16 << 20), 100 << 20))

    # ---- tile-size selection --------------------------------------------------
    tile_b = max(8, min(int(tile_b), _round_up(B, 8)))
    tile_b = _round_up(tile_b, 8)
    if pl.cdiv(B, tile_b) == 1 and B >= 16:
        # >= 2 grid steps so both v7x TensorCores get work.
        tile_b = _round_up(pl.cdiv(B, 2), 8)
    while working_set(tile_b) > vmem_cap and tile_b > 8:
        # Shrink the tile instead of clamping the VMEM limit below requirement.
        tile_b = max(8, _round_up(tile_b // 2, 8))
    n_tiles = pl.cdiv(B, tile_b)
    if n_tiles > 1 and n_tiles % 2 == 1:
        # Prefer an even step count (v7x megacore balance) at ~constant work.
        tile_b = max(8, _round_up(pl.cdiv(B, n_tiles + 1), 8))
        n_tiles = pl.cdiv(B, tile_b)
    Bp = n_tiles * tile_b
    pad = Bp - B

    vmem_limit = int(max(16 << 20, min(working_set(tile_b), vmem_cap)))

    u_pad = jnp.pad(u_id, (0, pad))      # pad with id 0; padded rows are dropped
    i_pad = jnp.pad(i_id, (0, pad))

    # ---- gathers (no concatenations; each stream feeds the kernel directly) ---
    # TODO(synk): fuse these gathers into the kernel (PrefetchScalarGridSpec
    # scalar-prefetched ids + per-row make_async_copy DMA gather) to remove the
    # extra HBM round trip on the gathered streams.
    U = params["user_emb"][u_pad].astype(emb_dtype)                      # (Bp, E)
    I = params["item_emb"][i_pad].astype(emb_dtype)                      # (Bp, E)
    Uv = params["user_visual_emb"][u_pad].astype(emb_dtype)              # (Bp, Vp)
    Uc = params["user_category_emb"][u_pad].astype(emb_dtype)            # (Bp, E)
    vis = params["visual_feature_table"][i_pad].astype(matmul_dtype)     # (Bp, Vs)
    cemb = params["category_emb"][params["category_id_table"][i_pad]
                                  ].astype(matmul_dtype)                 # (Bp, C)

    # ---- batch-independent weight prep (pinned in VMEM across tiles) ----------
    # TODO(synk): fp8 (v7x) / int8 (v6e) quantized path for vis / Wv_t.
    Wv_t = params["visual_projection_w"].T.astype(matmul_dtype)          # (Vs, Vp)
    Wc_t = params["item_category_projection_w"].T.astype(matmul_dtype)   # (C,  E)
    bv = params["visual_projection_b"].reshape(1, Vp).astype(jnp.float32)
    bc = params["item_category_projection_b"].reshape(1, E).astype(jnp.float32)

    a = jax.nn.sigmoid(params["alpha"][0])
    scal = jnp.stack([1.0 - a, a]).astype(jnp.float32)                   # (2,) SMEM

    flops = int(2 * Bp * (Vs * Vp + C * E) + 6 * Bp * (2 * E + Vp))
    bytes_accessed = int(Bp * ((3 * E + Vp) * ebytes + (Vs + C) * mbytes + 4)
                         + weight_bytes)

    out = pl.pallas_call(
        vbpr_kernel,
        out_shape=jax.ShapeDtypeStruct((Bp, 1), jnp.float32),
        grid=(n_tiles,),
        in_specs=[
            pl.BlockSpec(memory_space=pltpu.MemorySpace.SMEM),           # scal
            pl.BlockSpec((tile_b, E), lambda i: (i, 0)),                 # U
            pl.BlockSpec((tile_b, E), lambda i: (i, 0)),                 # I
            pl.BlockSpec((tile_b, Vp), lambda i: (i, 0)),                # U_v
            pl.BlockSpec((tile_b, E), lambda i: (i, 0)),                 # U_c
            pl.BlockSpec((tile_b, Vs), lambda i: (i, 0)),                # visual feats
            pl.BlockSpec((tile_b, C), lambda i: (i, 0)),                 # category emb
            pl.BlockSpec((Vs, Vp), lambda i: (0, 0)),                    # Wv^T (pinned)
            pl.BlockSpec((C, E), lambda i: (0, 0)),                      # Wc^T (pinned)
            pl.BlockSpec((1, Vp), lambda i: (0, 0)),                     # bv   (pinned)
            pl.BlockSpec((1, E), lambda i: (0, 0)),                      # bc   (pinned)
        ],
        out_specs=pl.BlockSpec((tile_b, 1), lambda i: (i, 0)),
        compiler_params=pltpu.CompilerParams(
            dimension_semantics=("parallel",),
            vmem_limit_bytes=vmem_limit),
        cost_estimate=pl.CostEstimate(flops=flops, transcendentals=0,
                                      bytes_accessed=bytes_accessed),
    )(scal, U, I, Uv, Uc, vis, cemb, Wv_t, Wc_t, bv, bc)

    # Epilogue: add the (1-a)-scaled bias column on the unpadded batch only.
    bias = (params["user_bias"][u_id][:, 0]
            + params["item_bias"][i_id][:, 0]
            + params["mean"][0]).astype(jnp.float32)
    return out[:B, 0] + (1.0 - a) * bias   # (B,)


def init_params(key, num_users, num_items, embedding_size, visual_size,
                category_size, visual_projection_size, max_category_id,
                mean=0.0, alpha=0.5):
    ks = jax.random.split(key, 12)
    f32 = jnp.float32
    lin_v = 1.0 / jnp.sqrt(visual_size)
    lin_c = 1.0 / jnp.sqrt(category_size)
    return {
        "alpha": jnp.array([alpha], f32),
        "mean": jnp.array([mean], f32),
        "user_emb": jax.random.uniform(ks[0], (num_users, embedding_size), f32, 0.0, 0.005),
        "user_visual_emb": jax.random.uniform(ks[1], (num_users, visual_projection_size), f32, 0.0, 0.005),
        "user_category_emb": jax.random.uniform(ks[2], (num_users, embedding_size), f32, 0.0, 0.005),
        "user_bias": jax.random.uniform(ks[3], (num_users, 1), f32, -0.01, 0.01),
        "item_emb": jax.random.uniform(ks[4], (num_items, embedding_size), f32, 0.0, 0.005),
        "item_bias": jax.random.uniform(ks[5], (num_items, 1), f32, -0.01, 0.01),
        "visual_projection_w": jax.random.uniform(ks[6], (visual_projection_size, visual_size), f32, -lin_v, lin_v),
        "visual_projection_b": jax.random.uniform(ks[7], (visual_projection_size,), f32, -lin_v, lin_v),
        "item_category_projection_w": jax.random.uniform(ks[8], (embedding_size, category_size), f32, -lin_c, lin_c),
        "item_category_projection_b": jax.random.uniform(ks[9], (embedding_size,), f32, -lin_c, lin_c),
        "category_emb": jax.random.uniform(ks[10], (max_category_id, category_size), f32, 0.0, 0.005),
        "visual_feature_table": jax.random.normal(ks[11], (num_items, visual_size), f32),
        # dict-style category_features replaced by a dense per-item id table
        "category_id_table": (jnp.arange(num_items, dtype=jnp.int32) % max_category_id),
    }


def vbpr_reference(params, u_id, i_id):
    """Pure-JAX reference mirroring the PyTorch forward exactly."""
    U = params["user_emb"][u_id]
    b_u = params["user_bias"][u_id][:, 0]
    I = params["item_emb"][i_id]
    b_i = params["item_bias"][i_id][:, 0]
    U_v = params["user_visual_emb"][u_id]
    mf_pred = jnp.sum(U * I, axis=1)

    vis = params["visual_feature_table"][i_id]
    I_v = vis @ params["visual_projection_w"].T + params["visual_projection_b"]
    visual_pred = jnp.sum(U_v * I_v, axis=1)

    U_c = params["user_category_emb"][u_id]
    C_emb = params["category_emb"][params["category_id_table"][i_id]]
    I_c = C_emb @ params["item_category_projection_w"].T + params["item_category_projection_b"]
    category_pred = jnp.sum(U_c * I_c, axis=1)

    mf_full = mf_pred + b_u + b_i + params["mean"][0]
    content_pred = visual_pred + category_pred
    a = jax.nn.sigmoid(params["alpha"][0])
    return (1.0 - a) * mf_full + a * content_pred   # dropout(p=0) == identity


if __name__ == "__main__":
    # Small shapes consistent with the module's forward.
    num_users = 64
    num_items = 128
    embedding_size = 32
    visual_size = 64
    category_size = 16
    visual_projection_size = 32
    max_category_id = 10
    batch = 200   # auto-split into 2 batch tiles (exercises the padded last tile)

    key = jax.random.PRNGKey(0)
    kp, ku, ki = jax.random.split(key, 3)
    params = init_params(kp, num_users, num_items, embedding_size, visual_size,
                         category_size, visual_projection_size, max_category_id)

    u_id = jax.random.randint(ku, (batch,), 0, num_users, dtype=jnp.int32)
    i_id = jax.random.randint(ki, (batch,), 0, num_items, dtype=jnp.int32)

    ref = vbpr_reference(params, u_id, i_id)

    # f32 path: exact match against the reference.
    pred = jax.block_until_ready(
        vbpr_forward(params, u_id, i_id,
                     matmul_dtype=jnp.float32, emb_dtype=jnp.float32))
    assert pred.shape == (batch,)
    assert jnp.allclose(pred, ref, atol=1e-5, rtol=1e-5), float(jnp.abs(pred - ref).max())

    # Default bf16 path (halves the HBM traffic on every generation): looser tol.
    pred_bf16 = jax.block_until_ready(vbpr_forward(params, u_id, i_id))
    assert jnp.allclose(pred_bf16, ref, atol=5e-3, rtol=5e-2), float(jnp.abs(pred_bf16 - ref).max())

    print("KERNEL_OK")
</pallas_src>

<mosaic_0001>
module attributes {stable_mosaic.version = 11 : i64} {
  func.func @vbpr_kernel(%arg0: i32, %arg1: memref<2xf32, #tpu.memory_space<smem>>, %arg2: memref<104x32xf32, #tpu.memory_space<vmem>>, %arg3: memref<104x32xf32, #tpu.memory_space<vmem>>, %arg4: memref<104x32xf32, #tpu.memory_space<vmem>>, %arg5: memref<104x32xf32, #tpu.memory_space<vmem>>, %arg6: memref<104x64xf32, #tpu.memory_space<vmem>>, %arg7: memref<104x16xf32, #tpu.memory_space<vmem>>, %arg8: memref<64x32xf32, #tpu.memory_space<vmem>>, %arg9: memref<16x32xf32, #tpu.memory_space<vmem>>, %arg10: memref<1x32xf32, #tpu.memory_space<vmem>>, %arg11: memref<1x32xf32, #tpu.memory_space<vmem>>, %arg12: memref<104x1xf32, #tpu.memory_space<vmem>>) attributes {dimension_semantics = [#tpu.dimension_semantics<parallel>], iteration_bounds = array<i64: 2>, scalar_prefetch = 0 : i64, scratch_operands = 0 : i64, tpu.core_type = #tpu.core_type<tc>, window_params = [{transform_indices = @transform_0, window_bounds = array<i64: 2>}, {transform_indices = @transform_1, window_bounds = array<i64: 104, 32>}, {transform_indices = @transform_2, window_bounds = array<i64: 104, 32>}, {transform_indices = @transform_3, window_bounds = array<i64: 104, 32>}, {transform_indices = @transform_4, window_bounds = array<i64: 104, 32>}, {transform_indices = @transform_5, window_bounds = array<i64: 104, 64>}, {transform_indices = @transform_6, window_bounds = array<i64: 104, 16>}, {pipeline_mode = #tpu.pipeline_mode<synchronous>, transform_indices = @transform_7, window_bounds = array<i64: 64, 32>}, {pipeline_mode = #tpu.pipeline_mode<synchronous>, transform_indices = @transform_8, window_bounds = array<i64: 16, 32>}, {pipeline_mode = #tpu.pipeline_mode<synchronous>, transform_indices = @transform_9, window_bounds = array<i64: 1, 32>}, {pipeline_mode = #tpu.pipeline_mode<synchronous>, transform_indices = @transform_10, window_bounds = array<i64: 1, 32>}, {transform_indices = @transform_11, window_bounds = array<i64: 104, 1>}]} {
    %c0 = arith.constant 0 : index
    %0 = memref.load %arg1[%c0] : memref<2xf32, #tpu.memory_space<smem>>
    %c1 = arith.constant 1 : index
    %1 = memref.load %arg1[%c1] : memref<2xf32, #tpu.memory_space<smem>>
    %c0_0 = arith.constant 0 : index
    %c0_1 = arith.constant 0 : index
    %2 = vector.load %arg6[%c0_0, %c0_1] : memref<104x64xf32, #tpu.memory_space<vmem>>, vector<104x64xf32>
    %c0_2 = arith.constant 0 : index
    %c0_3 = arith.constant 0 : index
    %3 = vector.load %arg8[%c0_2, %c0_3] : memref<64x32xf32, #tpu.memory_space<vmem>>, vector<64x32xf32>
    %cst = arith.constant dense<0.000000e+00> : vector<104x32xf32>
    %4 = tpu.matmul %2, %3, %cst {dimension_numbers = #tpu.dot_dimension_numbers<[1], [0], [0], [1], [0, 0, 1, 1], [], []>} : vector<104x64xf32>, vector<64x32xf32>, vector<104x32xf32> -> vector<104x32xf32>
    %c0_4 = arith.constant 0 : index
    %c0_5 = arith.constant 0 : index
    %5 = vector.load %arg10[%c0_4, %c0_5] : memref<1x32xf32, #tpu.memory_space<vmem>>, vector<1x32xf32>
    %6 = vector.broadcast %5 : vector<1x32xf32> to vector<104x32xf32>
    %7 = arith.addf %4, %6 : vector<104x32xf32>
    %c0_6 = arith.constant 0 : index
    %c0_7 = arith.constant 0 : index
    %8 = vector.load %arg7[%c0_6, %c0_7] : memref<104x16xf32, #tpu.memory_space<vmem>>, vector<104x16xf32>
    %c0_8 = arith.constant 0 : index
    %c0_9 = arith.constant 0 : index
    %9 = vector.load %arg9[%c0_8, %c0_9] : memref<16x32xf32, #tpu.memory_space<vmem>>, vector<16x32xf32>
    %cst_10 = arith.constant dense<0.000000e+00> : vector<104x32xf32>
    %10 = tpu.matmul %8, %9, %cst_10 {dimension_numbers = #tpu.dot_dimension_numbers<[1], [0], [0], [1], [0, 0, 1, 1], [], []>} : vector<104x16xf32>, vector<16x32xf32>, vector<104x32xf32> -> vector<104x32xf32>
    %c0_11 = arith.constant 0 : index
    %c0_12 = arith.constant 0 : index
    %11 = vector.load %arg11[%c0_11, %c0_12] : memref<1x32xf32, #tpu.memory_space<vmem>>, vector<1x32xf32>
    %12 = vector.broadcast %11 : vector<1x32xf32> to vector<104x32xf32>
    %13 = arith.addf %10, %12 : vector<104x32xf32>
    %c0_13 = arith.constant 0 : index
    %c0_14 = arith.constant 0 : index
    %14 = vector.load %arg4[%c0_13, %c0_14] : memref<104x32xf32, #tpu.memory_space<vmem>>, vector<104x32xf32>
    %15 = arith.mulf %14, %7 : vector<104x32xf32>
    %cst_15 = arith.constant dense<0.000000e+00> : vector<104xf32>
    %16 = vector.multi_reduction <add>, %15, %cst_15 [1] : vector<104x32xf32> to vector<104xf32>
    %17 = vector.shape_cast %16 : vector<104xf32> to vector<104x1xf32>
    %c0_16 = arith.constant 0 : index
    %c0_17 = arith.constant 0 : index
    %18 = vector.load %arg5[%c0_16, %c0_17] : memref<104x32xf32, #tpu.memory_space<vmem>>, vector<104x32xf32>
    %19 = arith.mulf %18, %13 : vector<104x32xf32>
    %cst_18 = arith.constant dense<0.000000e+00> : vector<104xf32>
    %20 = vector.multi_reduction <add>, %19, %cst_18 [1] : vector<104x32xf32> to vector<104xf32>
    %21 = vector.shape_cast %20 : vector<104xf32> to vector<104x1xf32>
    %22 = arith.addf %17, %21 : vector<104x1xf32>
    %c0_19 = arith.constant 0 : index
    %c0_20 = arith.constant 0 : index
    %23 = vector.load %arg2[%c0_19, %c0_20] : memref<104x32xf32, #tpu.memory_space<vmem>>, vector<104x32xf32>
    %c0_21 = arith.constant 0 : index
    %c0_22 = arith.constant 0 : index
    %24 = vector.load %arg3[%c0_21, %c0_22] : memref<104x32xf32, #tpu.memory_space<vmem>>, vector<104x32xf32>
    %25 = arith.mulf %23, %24 : vector<104x32xf32>
    %cst_23 = arith.constant dense<0.000000e+00> : vector<104xf32>
    %26 = vector.multi_reduction <add>, %25, %cst_23 [1] : vector<104x32xf32> to vector<104xf32>
    %27 = vector.shape_cast %26 : vector<104xf32> to vector<104x1xf32>
    %28 = vector.broadcast %0 : f32 to vector<104x1xf32>
    %29 = arith.mulf %28, %27 : vector<104x1xf32>
    %30 = vector.broadcast %1 : f32 to vector<104x1xf32>
    %31 = arith.mulf %30, %22 : vector<104x1xf32>
    %32 = arith.addf %29, %31 : vector<104x1xf32>
    %c0_24 = arith.constant 0 : index
    %c0_25 = arith.constant 0 : index
    %33 = vector.load %arg12[%c0_24, %c0_25] : memref<104x1xf32, #tpu.memory_space<vmem>>, vector<104x1xf32>
    tpu.vector_store %arg12[%c0_24, %c0_25], %32 {strides = array<i32>} : memref<104x1xf32, #tpu.memory_space<vmem>>, vector<104x1xf32>,
    return
  }
  func.func @transform_0(%arg0: i32) -> i32 {
    %c0_i32 = arith.constant 0 : i32
    %c0_i32_0 = arith.constant 0 : i32
    return %c0_i32 : i32
  }
  func.func @transform_1(%arg0: i32) -> (i32, i32) {
    %c0_i32 = arith.constant 0 : i32
    %c0_i32_0 = arith.constant 0 : i32
    return %arg0, %c0_i32 : i32, i32
  }
  func.func @transform_2(%arg0: i32) -> (i32, i32) {
    %c0_i32 = arith.constant 0 : i32
    %c0_i32_0 = arith.constant 0 : i32
    return %arg0, %c0_i32 : i32, i32
  }
  func.func @transform_3(%arg0: i32) -> (i32, i32) {
    %c0_i32 = arith.constant 0 : i32
    %c0_i32_0 = arith.constant 0 : i32
    return %arg0, %c0_i32 : i32, i32
  }
  func.func @transform_4(%arg0: i32) -> (i32, i32) {
    %c0_i32 = arith.constant 0 : i32
    %c0_i32_0 = arith.constant 0 : i32
    return %arg0, %c0_i32 : i32, i32
  }
  func.func @transform_5(%arg0: i32) -> (i32, i32) {
    %c0_i32 = arith.constant 0 : i32
    %c0_i32_0 = arith.constant 0 : i32
    return %arg0, %c0_i32 : i32, i32
  }
  func.func @transform_6(%arg0: i32) -> (i32, i32) {
    %c0_i32 = arith.constant 0 : i32
    %c0_i32_0 = arith.constant 0 : i32
    return %arg0, %c0_i32 : i32, i32
  }
  func.func @transform_7(%arg0: i32) -> (i32, i32) {
    %c0_i32 = arith.constant 0 : i32
    %c0_i32_0 = arith.constant 0 : i32
    %c0_i32_1 = arith.constant 0 : i32
    return %c0_i32, %c0_i32_0 : i32, i32
  }
  func.func @transform_8(%arg0: i32) -> (i32, i32) {
    %c0_i32 = arith.constant 0 : i32
    %c0_i32_0 = arith.constant 0 : i32
    %c0_i32_1 = arith.constant 0 : i32
    return %c0_i32, %c0_i32_0 : i32, i32
  }
  func.func @transform_9(%arg0: i32) -> (i32, i32) {
    %c0_i32 = arith.constant 0 : i32
    %c0_i32_0 = arith.constant 0 : i32
    %c0_i32_1 = arith.constant 0 : i32
    return %c0_i32, %c0_i32_0 : i32, i32
  }
  func.func @transform_10(%arg0: i32) -> (i32, i32) {
    %c0_i32 = arith.constant 0 : i32
    %c0_i32_0 = arith.constant 0 : i32
    %c0_i32_1 = arith.constant 0 : i32
    return %c0_i32, %c0_i32_0 : i32, i32
  }
  func.func @transform_11(%arg0: i32) -> (i32, i32) {
    %c0_i32 = arith.constant 0 : i32
    %c0_i32_0 = arith.constant 0 : i32
    return %arg0, %c0_i32 : i32, i32
  }
}

</mosaic_0001>

<bundles_post_ra>
// kernel: tpu_custom_call.1
= control target key start
LH: loop header
LB: loop body
LE: loop exit
PB: predicated region body
PF: predicated region fallthrough
CT: control target
= control target key end

     0   :  { %16 = vsyncpa [#allocation3], 0  ;;  %s1618_s17 = smov 0   ;;  %s2027_s0 = inlined_call_operand.vmem [shape: f32[2], index: 0, kind: input, shape index: {}]   ;;  %s2028_s1 = inlined_call_operand.vmem [shape: f32[208,32], index: 1, kind: input, shape index: {}]   ;;  %s2029_s2 = inlined_call_operand.vmem [shape: f32[208,32], index: 2, kind: input, shape index: {}]   ;;  %s2030_s3 = inlined_call_operand.vmem [shape: f32[208,32], index: 3, kind: input, shape index: {}]   ;;  %s2031_s4 = inlined_call_operand.vmem [shape: f32[208,32], index: 4, kind: input, shape index: {}]   ;;  %s2032_s5 = inlined_call_operand.vmem [shape: f32[208,64], index: 5, kind: input, shape index: {}]   ;;  %s2033_s6 = inlined_call_operand.vmem [shape: f32[208,16], index: 6, kind: input, shape index: {}]   ;;  %s2034_s7 = inlined_call_operand.vmem [shape: f32[64,32], index: 7, kind: input, shape index: {}]   ;;  %s2035_s8 = inlined_call_operand.vmem [shape: f32[16,32], index: 8, kind: input, shape index: {}]   ;;  %s2036_s9 = inlined_call_operand.vmem [shape: f32[1,32], index: 9, kind: input, shape index: {}]   ;;  %s2037_s10 = inlined_call_operand.vmem [shape: f32[1,32], index: 10, kind: input, shape index: {}]   ;;  %s2038_s11 = inlined_call_operand.vmem [shape: f32[208,1], index: 11, kind: output, shape index: {}]  }
   0x1 LB: > { %s1311_s18 = sadd.s32 4294967295, %s1552_s17   ;;  %p1313_p0 = scmp.ge.s32.totalorder %s1552_s17, 1  ;;  %s1552_s17 = sphi %s1618_s17, %s22_s17  }
   0x2   : > { %p314_p1 = scmp.lt.s32.totalorder %s1552_s17, 3  ;;  %s327_s21 = sshll.u32 %s2027_s0, 4  ;;  %s328_s21 = int_to_ptr.vmem [resolvable:$true] %s327_s21 }
   0x3   : > { %p1635_p3 = scmp.eq.s32.totalorder %s1311_s18, 0  ;;  %s1527_s24 = scalar_lea.vmem %s328_s21, 16 }
   0x4   : > { %p1629_p2 = pnand %p1313_p0, %p314_p1  ;;  %p1528_p6 = scmp.ne.s32.totalorder %s328_s21, %s1527_s24 }
   0x5   : > { %p1535_p10 = scmp.lt.s32.totalorder %s328_s21, %s328_s21  ;;  %p1536_p11 = scmp.lt.s32.totalorder %s1527_s24, %s1527_s24 }
   0x6   : > { %p1509_p4 = pneg %p1629_p2 }
   0x7   : > { %p1537_p12 = por %p1536_p11, %p1535_p10 }
   0x8   : > { %p1510_p5 = pnand %p1635_p3, %p1509_p4 }
   0xa   : > { %p1529_p7 = pneg %p1510_p5 }
   0xc   : > { %p1530_p8 = pnand %p1529_p7, %p1528_p6 }
   0xe   : > { %p1531_p9 = pneg %p1530_p8 }
  0x10   : > { %p1538_p13 = pnand %p1537_p12, %p1531_p9 }
  0x12   : > { %1541 = shalt.err (!%p1538_p13)
}
  0x13   : > { %s1554_s25 = smov [#allocation2]   ;;  %406 = sbr.rel (%p1629_p2) target bundleno = 463 (0x1cf), region = 64 }
  0x14   : > { %1512 = dma.vmem_to_smem (!%p1510_p5), %s328_s21, 16, %s1554_s25, [#allocation3]  }
  0x1a   : > { %1547 = dma.done.wait (%p1635_p3), [#allocation3], 16  }
  0x1b   : > { %1549 = vsyncadd (%p1635_p3), [#allocation3], 4294967280 }
  0x1c   : > { %412 = sfence }
  0x1d   : > { %v529_v0 = vld [vmem:[%s2034_s7] sm:$0xff]  ;;  %v530_v1 = vld [vmem:[%s2034_s7 + $0x8] sm:$0xff]  ;;  %v1555_v3 = vmov 0.0|0.0   ;;  %v531_v6 = vld [vmem:[%s2034_s7 + $0x10] sm:$0xff]  ;;  %s472_s21 = smul.u32 13, %s1311_s18  ;;  %vm1556_vm0 = vmmov 0  }
  0x1e   : > { %v727_v2 = vld [vmem:[%s2035_s8] sm:$0xff]  ;;  %1490 = vmatprep.subr.bf16.mxu0 %v1555_v3  ;;  %v1491_v4 = vpack.c.bf16 %v530_v1, %v529_v0  ;;  %1502 = vmatprep.subr.bf16.mxu1 %v1555_v3  ;;  %v728_v5 = vld [vmem:[%s2035_s8 + $0x8] sm:$0xff]  ;;  %v532_v7 = vld [vmem:[%s2034_s7 + $0x18] sm:$0xff]  ;;  %v1557_v9 = vmov 0.0   ;;  %vm736_vm1 = vcmask 130048   ;;  %vm544_vm2 = vcmask 523264  }
  0x1f   : > { %v1503_v8 = vpack.c.bf16 %v728_v5, %v727_v2  ;;  %1451 = vmatprep.mubr.msk.f32.mxu1 %vm1556_vm0, %v1557_v9  ;;  %1408 = vmatprep.mubr.msk.f32.mxu0 %vm1556_vm0, %v1557_v9  ;;  %v1494_v10 = vpack.c.bf16 %v532_v7, %v531_v6  ;;  %p473_p0 = scmp.lt.s32.totalorder %s472_s21, 25  ;;  %v533_v11 = vld [vmem:[%s2034_s7 + $0x20] sm:$0xff]  ;;  %v534_v12 = vld [vmem:[%s2034_s7 + $0x28] sm:$0xff]  ;;  %v535_v14 = vld [vmem:[%s2034_s7 + $0x30] sm:$0xff]  ;;  %vm932_vm3 = vcmask 261120   ;;  %s1325_s19 = sld [smem:[#allocation2 + $0x1]] }
  0x20   : > { %1492 = vmatpush3.bf16.msra.mxu0 %v1491_v4  ;;  %v1497_v13 = vpack.c.bf16 %v534_v12, %v533_v11  ;;  %v536_v15 = vld [vmem:[%s2034_s7 + $0x38] sm:$0xff]  ;;  %vm1169_vm4 = vcmask 7168  }
  0x21   : > { %1493 = vmatprep.subr.bf16.mxu0 %v1555_v3  ;;  %1504 = vmatpush3.bf16.msra.mxu1 %v1503_v8  ;;  %s2042_s21 = smov (!%p473_p0, %s472_s21), 25  ;;  %v1500_v18 = vpack.c.bf16 %v536_v15, %v535_v14 }
  0x22   : > { %s1679_s25 = sshll.u32 %s2042_s21, 3 }
  0x23   : > { %s1685_s28 = scalar_lea.vmem %s2033_s6, %s1679_s25  ;;  %s1702_s16 = scalar_lea.vmem %s2032_s5, %s1679_s25 }
  0x24   : > { %1495 = vmatpush3.bf16.msra.mxu0 %v1494_v10  ;;  %v714_v16 = vld [vmem:[%s1685_s28] sm:$0xff]  ;;  %v715_v17 = vld [vmem:[%s1685_s28 + $0x8] sm:$0xff]  ;;  %s1709_s21 = scalar_lea.vmem %s2028_s1, %s1679_s25  ;;  %v716_v19 = vld [vmem:[%s1685_s28 + $0x10] sm:$0xff]  ;;  %s1719_s24 = scalar_lea.vmem %s2029_s2, %s1679_s25 }
  0x25   : > { %1496 = vmatprep.subr.bf16.mxu0 %v1555_v3  ;;  %1452 = vmatmul.mubr.msk.f32.vlgmr.msra.gmra.mrb[0].mxu1 %vm736_vm1, %v714_v16  ;;  %v516_v20 = vld [vmem:[%s1702_s16] sm:$0xff]  ;;  %v717_v21 = vld [vmem:[%s1685_s28 + $0x18] sm:$0xff]  ;;  %v517_v22 = vld [vmem:[%s1702_s16 + $0x8] sm:$0xff]  ;;  %s1848_s27 = scalar_lea.vmem %s2031_s4, %s1679_s25  ;;  %s1864_s13 = scalar_lea.vmem %s2030_s3, %s1679_s25 }
  0x26   : > { %1454 = vmatprep.mubr.msk.f32.mxu1 %vm1556_vm0, %v1557_v9  ;;  %v1051_v23 = vld [vmem:[%s1709_s21 + $0x8] sm:$0xff]  ;;  %v1050_v25 = vld [vmem:[%s1709_s21] sm:$0xff]  ;;  %v1053_v29 = vld [vmem:[%s1709_s21 + $0x18] sm:$0xff]  ;;  %s1968_s22 = scalar_lea.vmem %s2038_s11, %s1679_s25 }
  0x27   : > { %v1064_v24 = vld [vmem:[%s1719_s24 + $0x8] sm:$0xff]  ;;  %v1063_v26 = vld [vmem:[%s1719_s24] sm:$0xff]  ;;  %v1066_v30 = vld [vmem:[%s1719_s24 + $0x18] sm:$0xff] }
  0x28   : > { %1498 = vmatpush3.bf16.msra.mxu0 %v1497_v13  ;;  %v1077_v27 = vmul.f32 %v1064_v24, %v1051_v23  ;;  %v1076_v28 = vmul.f32 %v1063_v26, %v1050_v25  ;;  %v1052_v31 = vld [vmem:[%s1709_s21 + $0x10] sm:$0xff]  ;;  %v1079_v35 = vmul.f32 %v1066_v30, %v1053_v29  ;;  %v1055_v37 = vld [vmem:[%s1709_s21 + $0x28] sm:$0xff]  ;;  %v1054_v39 = vld [vmem:[%s1709_s21 + $0x20] sm:$0xff] }
  0x29   : > { %1499 = vmatprep.subr.bf16.mxu0 %v1555_v3  ;;  %1455 = vmatmul.mubr.msk.f32.gmra.mrb[2].mxu1 %vm736_vm1, %v715_v17  ;;  %v1065_v32 = vld [vmem:[%s1719_s24 + $0x10] sm:$0xff]  ;;  %v1068_v38 = vld [vmem:[%s1719_s24 + $0x28] sm:$0xff]  ;;  %v1067_v40 = vld [vmem:[%s1719_s24 + $0x20] sm:$0xff] }
  0x2a   : > { %1457 = vmatprep.mubr.msk.f32.mxu1 %vm1556_vm0, %v1557_v9  ;;  %v1092_v33 = vsel %vm932_vm3, %v1077_v27, 0.0  ;;  %v1089_v34 = vsel %vm932_vm3, %v1076_v28, 0.0  ;;  %v1078_v36 = vmul.f32 %v1065_v32, %v1052_v31  ;;  %v718_v41 = vld [vmem:[%s1685_s28 + $0x20] sm:$0xff]  ;;  %v518_v42 = vld [vmem:[%s1702_s16 + $0x10] sm:$0xff]  ;;  %v1098_v43 = vsel %vm932_vm3, %v1079_v35, 0.0  ;;  %v1057_v47 = vld [vmem:[%s1709_s21 + $0x38] sm:$0xff] }
  0x2b   : > { %1093 = vadd.xlane.f32.xlu1 %v1092_v33  ;;  %1090 = vadd.xlane.f32.xlu0 %v1089_v34  ;;  %v1081_v45 = vmul.f32 %v1068_v38, %v1055_v37  ;;  %v1080_v46 = vmul.f32 %v1067_v40, %v1054_v39  ;;  %v1070_v48 = vld [vmem:[%s1719_s24 + $0x38] sm:$0xff]  ;;  %v1056_v49 = vld [vmem:[%s1709_s21 + $0x30] sm:$0xff]  ;;  %v719_v52 = vld [vmem:[%s1685_s28 + $0x28] sm:$0xff] }
  0x2c   : > { %1501 = vmatpush3.bf16.msra.mxu0 %v1500_v18  ;;  %v1095_v44 = vsel %vm932_vm3, %v1078_v36, 0.0  ;;  %v1069_v50 = vld [vmem:[%s1719_s24 + $0x30] sm:$0xff]  ;;  %v519_v51 = vld [vmem:[%s1702_s16 + $0x18] sm:$0xff]  ;;  %v1083_v55 = vmul.f32 %v1070_v48, %v1057_v47  ;;  %v520_v57 = vld [vmem:[%s1702_s16 + $0x20] sm:$0xff] }
  0x2d   : > { %1458 = vmatmul.mubr.msk.f32.gmra.mrb[4].mxu1 %vm736_vm1, %v716_v19  ;;  %v1104_v53 = vsel %vm932_vm3, %v1081_v45, 0.0  ;;  %v1101_v54 = vsel %vm932_vm3, %v1080_v46, 0.0  ;;  %v1082_v56 = vmul.f32 %v1069_v50, %v1056_v49  ;;  %v720_v58 = vld [vmem:[%s1685_s28 + $0x30] sm:$0xff]  ;;  %v521_v61 = vld [vmem:[%s1702_s16 + $0x28] sm:$0xff]  ;;  %v721_v62 = vld [vmem:[%s1685_s28 + $0x38] sm:$0xff] }
  0x2e   : > { %1460 = vmatprep.mubr.msk.f32.mxu1 %vm1556_vm0, %v1557_v9  ;;  %v1110_v59 = vsel %vm932_vm3, %v1083_v55, 0.0  ;;  %v522_v63 = vld [vmem:[%s1702_s16 + $0x30] sm:$0xff]  ;;  %v722_v0 = vld [vmem:[%s1685_s28 + $0x40] sm:$0xff]  ;;  %v523_v1 = vld [vmem:[%s1702_s16 + $0x38] sm:$0xff] }
  0x2f   : > { %1409 = vmatmul.mubr.msk.f32.vlgmr.msra.gmra.mrb[0].mxu0 %vm544_vm2, %v516_v20  ;;  %1099 = vadd.xlane.f32.xlu1 %v1098_v43  ;;  %v1107_v60 = vsel %vm932_vm3, %v1082_v56, 0.0  ;;  %v723_v2 = vld [vmem:[%s1685_s28 + $0x48] sm:$0xff]  ;;  %v524_v3 = vld [vmem:[%s1702_s16 + $0x40] sm:$0xff]  ;;  %v724_v4 = vld [vmem:[%s1685_s28 + $0x50] sm:$0xff] }
  0x30   : > { %1411 = vmatprep.mubr.msk.f32.mxu0 %vm1556_vm0, %v1557_v9  ;;  %1096 = vadd.xlane.f32.xlu0 %v1095_v44  ;;  %v525_v5 = vld [vmem:[%s1702_s16 + $0x48] sm:$0xff]  ;;  %v725_v6 = vld [vmem:[%s1685_s28 + $0x58] sm:$0xff]  ;;  %v526_v7 = vld [vmem:[%s1702_s16 + $0x50] sm:$0xff] }
  0x31   : > { %1461 = vmatmul.mubr.msk.f32.gmra.mrb[6].mxu1 %vm736_vm1, %v717_v21  ;;  %v726_v8 = vld [vmem:[%s1685_s28 + $0x60] sm:$0xff]  ;;  %v527_v10 = vld [vmem:[%s1702_s16 + $0x58] sm:$0xff]  ;;  %v1059_v12 = vld [vmem:[%s1709_s21 + $0x48] sm:$0xff] }
  0x32   : > { %1463 = vmatprep.mubr.msk.f32.mxu1 %vm1556_vm0, %v1557_v9  ;;  %v528_v11 = vld [vmem:[%s1702_s16 + $0x60] sm:$0xff]  ;;  %v1072_v13 = vld [vmem:[%s1719_s24 + $0x48] sm:$0xff]  ;;  %v1060_v20 = vld [vmem:[%s1709_s21 + $0x50] sm:$0xff]  ;;  %s514_s16 = sld [smem:[#allocation2]] }
  0x33   : > { %1412 = vmatmul.mubr.msk.f32.gmra.mrb[2].mxu0 %vm544_vm2, %v517_v22  ;;  %1105 = vadd.xlane.f32.xlu1 %v1104_v53  ;;  %v1058_v14 = vld [vmem:[%s1709_s21 + $0x40] sm:$0xff]  ;;  %v1085_v15 = vmul.f32 %v1072_v13, %v1059_v12  ;;  %v1073_v21 = vld [vmem:[%s1719_s24 + $0x50] sm:$0xff]  ;;  %v973_v30 = vld [vmem:[%s1848_s27 + $0x8] sm:$0xff] }
  0x34   : > { %1414 = vmatprep.mubr.msk.f32.mxu0 %vm1556_vm0, %v1557_v9  ;;  %1102 = vadd.xlane.f32.xlu0 %v1101_v54  ;;  %v1071_v16 = vld [vmem:[%s1719_s24 + $0x40] sm:$0xff]  ;;  %v974_v38 = vld [vmem:[%s1848_s27 + $0x10] sm:$0xff]  ;;  %v975_v49 = vld [vmem:[%s1848_s27 + $0x18] sm:$0xff] }
  0x35   : > { %1464 = vmatmul.mubr.msk.f32.gmra.mrb[8].mxu1 %vm736_vm1, %v718_v41  ;;  %v1084_v17 = vmul.f32 %v1071_v16, %v1058_v14  ;;  %v1116_v18 = vsel %vm932_vm3, %v1085_v15, 0.0  ;;  %v1853_v23 = vld [vmem:[%s2037_s10] ss:$0 sm:$0xff]  ;;  %v907_v56 = vld [vmem:[%s1864_s13 + $0x8] sm:$0xff]  ;;  %v909_v16 = vld [vmem:[%s1864_s13 + $0x18] sm:$0xff] }
  0x36   : > { %1466 = vmatprep.mubr.msk.f32.mxu1 %vm1556_vm0, %v1557_v9  ;;  %v972_v25 = vld [vmem:[%s1848_s27] sm:$0xff] }
  0x37   : > { %1415 = vmatmul.mubr.msk.f32.gmra.mrb[4].mxu0 %vm544_vm2, %v518_v42  ;;  %1111 = vadd.xlane.f32.xlu1 %v1110_v59  ;;  %v1113_v19 = vsel %vm932_vm3, %v1084_v17, 0.0  ;;  %v1869_v34 = vld [vmem:[%s2036_s9] ss:$0 sm:$0xff] }
  0x38   : > { %1417 = vmatprep.mubr.msk.f32.mxu0 %vm1556_vm0, %v1557_v9  ;;  %1108 = vadd.xlane.f32.xlu0 %v1107_v60  ;;  %v906_v39 = vld [vmem:[%s1864_s13] sm:$0xff] }
  0x39   : > { %1467 = vmatmul.mubr.msk.f32.gmra.mrb[10].mxu1 %vm736_vm1, %v719_v52  ;;  %v976_v60 = vld [vmem:[%s1848_s27 + $0x20] sm:$0xff] }
  0x3a   : > { %1469 = vmatprep.mubr.msk.f32.mxu1 %vm1556_vm0, %v1557_v9 }
  0x3b   : > { %1418 = vmatmul.mubr.msk.f32.gmra.mrb[6].mxu0 %vm544_vm2, %v519_v51  ;;  %1117 = vadd.xlane.f32.xlu1 %v1116_v18 }
  0x3c   : > { %1420 = vmatprep.mubr.msk.f32.mxu0 %vm1556_vm0, %v1557_v9  ;;  %1114 = vadd.xlane.f32.xlu0 %v1113_v19 }
  0x3d   : > { %1470 = vmatmul.mubr.msk.f32.gmra.mrb[12].mxu1 %vm736_vm1, %v720_v58 }
  0x3e   : > { %1472 = vmatprep.mubr.msk.f32.mxu1 %vm1556_vm0, %v1557_v9 }
  0x3f   : > { %1421 = vmatmul.mubr.msk.f32.gmra.mrb[8].mxu0 %vm544_vm2, %v520_v57 }
  0x40   : > { %1423 = vmatprep.mubr.msk.f32.mxu0 %vm1556_vm0, %v1557_v9 }
  0x41   : > { %1473 = vmatmul.mubr.msk.f32.gmra.mrb[14].mxu1 %vm736_vm1, %v721_v62 }
  0x42   : > { %1475 = vmatprep.mubr.msk.f32.mxu1 %vm1556_vm0, %v1557_v9 }
  0x43   : > { %1424 = vmatmul.mubr.msk.f32.gmra.mrb[10].mxu0 %vm544_vm2, %v521_v61 }
  0x44   : > { %1426 = vmatprep.mubr.msk.f32.mxu0 %vm1556_vm0, %v1557_v9 }
  0x45   : > { %1476 = vmatmul.mubr.msk.f32.gmra.mrb[16].mxu1 %vm736_vm1, %v722_v0 }
  0x46   : > { %1478 = vmatprep.mubr.msk.f32.mxu1 %vm1556_vm0, %v1557_v9 }
  0x47   : > { %1427 = vmatmul.mubr.msk.f32.gmra.mrb[12].mxu0 %vm544_vm2, %v522_v63 }
  0x48   : > { %1429 = vmatprep.mubr.msk.f32.mxu0 %vm1556_vm0, %v1557_v9 }
  0x49   : > { %1479 = vmatmul.mubr.msk.f32.gmra.mrb[18].mxu1 %vm736_vm1, %v723_v2 }
  0x4a   : > { %1481 = vmatprep.mubr.msk.f32.mxu1 %vm1556_vm0, %v1557_v9 }
  0x4b   : > { %1430 = vmatmul.mubr.msk.f32.gmra.mrb[14].mxu0 %vm544_vm2, %v523_v1 }
  0x4c   : > { %1432 = vmatprep.mubr.msk.f32.mxu0 %vm1556_vm0, %v1557_v9 }
  0x4d   : > { %1482 = vmatmul.mubr.msk.f32.gmra.mrb[20].mxu1 %vm736_vm1, %v724_v4 }
  0x4e   : > { %1484 = vmatprep.mubr.msk.f32.mxu1 %vm1556_vm0, %v1557_v9 }
  0x4f   : > { %1433 = vmatmul.mubr.msk.f32.gmra.mrb[16].mxu0 %vm544_vm2, %v524_v3  ;;  %v908_v3 = vld [vmem:[%s1864_s13 + $0x10] sm:$0xff] }
  0x50   : > { %1435 = vmatprep.mubr.msk.f32.mxu0 %vm1556_vm0, %v1557_v9 }
  0x51   : > { %1485 = vmatmul.mubr.msk.f32.gmra.mrb[22].mxu1 %vm736_vm1, %v725_v6 }
  0x52   : > { %1487 = vmatprep.mubr.msk.f32.mxu1 %vm1556_vm0, %v1557_v9 }
  0x53   : > { %1436 = vmatmul.mubr.msk.f32.gmra.mrb[18].mxu0 %vm544_vm2, %v525_v5 }
  0x54   : > { %1438 = vmatprep.mubr.msk.f32.mxu0 %vm1556_vm0, %v1557_v9 }
  0x55   : > { %1488 = vmatmul.mubr.msk.f32.gmra.mrb[24].mxu1 %vm736_vm1, %v726_v8  ;;  %v977_v8 = vld [vmem:[%s1848_s27 + $0x28] sm:$0xff] }
  0x57   : > { %1439 = vmatmul.mubr.msk.f32.gmra.mrb[20].mxu0 %vm544_vm2, %v526_v7 }
  0x58   : > { %1441 = vmatprep.mubr.msk.f32.mxu0 %vm1556_vm0, %v1557_v9 }
  0x5b   : > { %1442 = vmatmul.mubr.msk.f32.gmra.mrb[22].mxu0 %vm544_vm2, %v527_v10 }
  0x5c   : > { %1444 = vmatprep.mubr.msk.f32.mxu0 %vm1556_vm0, %v1557_v9  ;;  %v1086_v9 = vmul.f32 %v1073_v21, %v1060_v20  ;;  %v910_v21 = vld [vmem:[%s1864_s13 + $0x20] sm:$0xff] }
  0x5e   : > { %v1119_v22 = vsel %vm932_vm3, %v1086_v9, 0.0  ;;  %v978_v9 = vld [vmem:[%s1848_s27 + $0x30] sm:$0xff] }
  0x5f   : > { %1445 = vmatmul.mubr.msk.f32.gmra.mrb[24].mxu0 %vm544_vm2, %v528_v11  ;;  %1120 = vadd.xlane.f32.xlu0 %v1119_v22 }
  0xf8   : > { %v842_v24 = vpop.f32.mrb[0].mxu1 }
  0xf9   : > { %v843_v26 = vadd.f32 %v1853_v23, %v842_v24  ;;  %v1453_v27 = vpop.f32.mrb[1].mxu1 }
  0xfb   : > { %v985_v28 = vmul.f32 %v972_v25, %v843_v26 }
  0xfc   : > { %v847_v29 = vpop.f32.mrb[2].mxu1 }
  0xfd   : > { %v848_v31 = vadd.f32 %v1853_v23, %v847_v29  ;;  %v1456_v32 = vpop.f32.mrb[3].mxu1  ;;  %v998_v33 = vsel %vm932_vm3, %v985_v28, 0.0 }
  0xfe   : > { %999 = vadd.xlane.f32.xlu1 %v998_v33  ;;  %v979_v33 = vld [vmem:[%s1848_s27 + $0x38] sm:$0xff] }
  0xff   : > { %v986_v35 = vmul.f32 %v973_v30, %v848_v31 }
 0x100   : > { %v852_v36 = vpop.f32.mrb[4].mxu1 }
 0x101   : > { %v853_v40 = vadd.f32 %v1853_v23, %v852_v36  ;;  %v1459_v42 = vpop.f32.mrb[5].mxu1  ;;  %v1001_v44 = vsel %vm932_vm3, %v986_v35, 0.0 }
 0x102   : > { %v650_v37 = vpop.f32.mrb[0].mxu0  ;;  %1002 = vadd.xlane.f32.xlu0 %v1001_v44 }
 0x103   : > { %v651_v41 = vadd.f32 %v1869_v34, %v650_v37  ;;  %v1410_v43 = vpop.f32.mrb[1].mxu0  ;;  %v987_v45 = vmul.f32 %v974_v38, %v853_v40 }
 0x104   : > { %v857_v47 = vpop.f32.mrb[6].mxu1 }
 0x105   : > { %v919_v46 = vmul.f32 %v906_v39, %v651_v41  ;;  %v858_v50 = vadd.f32 %v1853_v23, %v857_v47  ;;  %v1462_v52 = vpop.f32.mrb[7].mxu1  ;;  %v1004_v54 = vsel %vm932_vm3, %v987_v45, 0.0  ;;  %v911_v41 = vld [vmem:[%s1864_s13 + $0x28] sm:$0xff]  ;;  %v980_v47 = vld [vmem:[%s1848_s27 + $0x40] sm:$0xff] }
 0x106   : > { %v655_v48 = vpop.f32.mrb[2].mxu0  ;;  %1005 = vadd.xlane.f32.xlu1 %v1004_v54 }
 0x107   : > { %v656_v51 = vadd.f32 %v1869_v34, %v655_v48  ;;  %v1413_v53 = vpop.f32.mrb[3].mxu0  ;;  %v933_v55 = vsel %vm932_vm3, %v919_v46, 0.0  ;;  %v988_v57 = vmul.f32 %v975_v49, %v858_v50  ;;  %v912_v46 = vld [vmem:[%s1864_s13 + $0x30] sm:$0xff] }
 0x108   : > { %934 = vadd.xlane.f32.xlu0 %v933_v55  ;;  %v862_v58 = vpop.f32.mrb[8].mxu1 }
 0x109   : > { %v863_v61 = vadd.f32 %v1853_v23, %v862_v58  ;;  %v1465_v63 = vpop.f32.mrb[9].mxu1  ;;  %v1007_v1 = vsel %vm932_vm3, %v988_v57, 0.0  ;;  %v920_v2 = vmul.f32 %v907_v56, %v656_v51  ;;  %v981_v58 = vld [vmem:[%s1848_s27 + $0x48] sm:$0xff] }
 0x10a   : > { %v660_v59 = vpop.f32.mrb[4].mxu0 }
 0x10b   : > { %v661_v62 = vadd.f32 %v1869_v34, %v660_v59  ;;  %v1416_v0 = vpop.f32.mrb[5].mxu0  ;;  %v989_v4 = vmul.f32 %v976_v60, %v863_v61  ;;  %v936_v14 = vsel %vm932_vm3, %v920_v2, 0.0 }
 0x10c   : > { %1008 = vadd.xlane.f32.xlu0 %v1007_v1  ;;  %v867_v6 = vpop.f32.mrb[10].mxu1  ;;  %v913_v1 = vld [vmem:[%s1864_s13 + $0x38] sm:$0xff] }
 0x10d   : > { %v921_v7 = vmul.f32 %v908_v3, %v661_v62  ;;  %v868_v11 = vadd.f32 %v1853_v23, %v867_v6  ;;  %v1010_v13 = vsel %vm932_vm3, %v989_v4, 0.0  ;;  %v1468_v15 = vpop.f32.mrb[11].mxu1  ;;  %v914_v6 = vld [vmem:[%s1864_s13 + $0x40] sm:$0xff] }
 0x10e   : > { %v665_v5 = vpop.f32.mrb[6].mxu0  ;;  %1011 = vadd.xlane.f32.xlu1 %v1010_v13 }
 0x10f   : > { %v666_v10 = vadd.f32 %v1869_v34, %v665_v5  ;;  %v1419_v12 = vpop.f32.mrb[7].mxu0  ;;  %v990_v17 = vmul.f32 %v977_v8, %v868_v11  ;;  %v939_v19 = vsel %vm932_vm3, %v921_v7, 0.0  ;;  %v982_v7 = vld [vmem:[%s1848_s27 + $0x50] sm:$0xff] }
 0x110   : > { %937 = vadd.xlane.f32.xlu0 %v936_v14  ;;  %v872_v20 = vpop.f32.mrb[12].mxu1 }
 0x111   : > { %v873_v25 = vadd.f32 %v1853_v23, %v872_v20  ;;  %v1013_v26 = vsel %vm932_vm3, %v990_v17, 0.0  ;;  %v1471_v27 = vpop.f32.mrb[13].mxu1  ;;  %v922_v28 = vmul.f32 %v909_v16, %v666_v10 }
 0x112   : > { %v670_v18 = vpop.f32.mrb[8].mxu0  ;;  %940 = vadd.xlane.f32.xlu1 %v939_v19  ;;  %v983_v19 = vld [vmem:[%s1848_s27 + $0x58] sm:$0xff] }
 0x113   : > { %v671_v22 = vadd.f32 %v1869_v34, %v670_v18  ;;  %v1422_v24 = vpop.f32.mrb[9].mxu0  ;;  %v991_v30 = vmul.f32 %v978_v9, %v873_v25  ;;  %v942_v38 = vsel %vm932_vm3, %v922_v28, 0.0 }
 0x114   : > { %1014 = vadd.xlane.f32.xlu0 %v1013_v26  ;;  %v877_v32 = vpop.f32.mrb[14].mxu1  ;;  %v915_v26 = vld [vmem:[%s1864_s13 + $0x48] sm:$0xff] }
 0x115   : > { %v923_v29 = vmul.f32 %v910_v21, %v671_v22  ;;  %v878_v36 = vadd.f32 %v1853_v23, %v877_v32  ;;  %v1474_v40 = vpop.f32.mrb[15].mxu1  ;;  %v1016_v42 = vsel %vm932_vm3, %v991_v30, 0.0  ;;  %v984_v32 = vld [vmem:[%s1848_s27 + $0x60] sm:$0xff] }
 0x116   : > { %v675_v31 = vpop.f32.mrb[10].mxu0  ;;  %943 = vadd.xlane.f32.xlu1 %v942_v38 }
 0x117   : > { %v676_v35 = vadd.f32 %v1869_v34, %v675_v31  ;;  %v1425_v37 = vpop.f32.mrb[11].mxu0  ;;  %v945_v39 = vsel %vm932_vm3, %v923_v29, 0.0  ;;  %v992_v43 = vmul.f32 %v979_v33, %v878_v36  ;;  %v916_v31 = vld [vmem:[%s1864_s13 + $0x50] sm:$0xff] }
 0x118   : > { %946 = vadd.xlane.f32.xlu0 %v945_v39  ;;  %v882_v45 = vpop.f32.mrb[16].mxu1 }
 0x119   : > { %v883_v50 = vadd.f32 %v1853_v23, %v882_v45  ;;  %v1019_v51 = vsel %vm932_vm3, %v992_v43, 0.0  ;;  %v1477_v52 = vpop.f32.mrb[17].mxu1  ;;  %v924_v53 = vmul.f32 %v911_v41, %v676_v35 }
 0x11a   : > { %v680_v44 = vpop.f32.mrb[12].mxu0  ;;  %1017 = vadd.xlane.f32.xlu1 %v1016_v42  ;;  %v1062_v52 = vld [vmem:[%s1709_s21 + $0x60] sm:$0xff] }
 0x11b   : > { %v681_v48 = vadd.f32 %v1869_v34, %v680_v44  ;;  %v1428_v49 = vpop.f32.mrb[13].mxu0  ;;  %v993_v55 = vmul.f32 %v980_v47, %v883_v50  ;;  %v948_v62 = vsel %vm932_vm3, %v924_v53, 0.0  ;;  %v1075_v53 = vld [vmem:[%s1719_s24 + $0x60] sm:$0xff] }
 0x11c   : > { %1020 = vadd.xlane.f32.xlu0 %v1019_v51  ;;  %v887_v57 = vpop.f32.mrb[18].mxu1  ;;  %v1061_v49 = vld [vmem:[%s1709_s21 + $0x58] sm:$0xff] }
 0x11d   : > { %v925_v54 = vmul.f32 %v912_v46, %v681_v48  ;;  %v888_v60 = vadd.f32 %v1853_v23, %v887_v57  ;;  %v1480_v0 = vpop.f32.mrb[19].mxu1  ;;  %v1022_v2 = vsel %vm932_vm3, %v993_v55, 0.0  ;;  %v918_v48 = vld [vmem:[%s1864_s13 + $0x60] sm:$0xff]  ;;  %v1074_v51 = vld [vmem:[%s1719_s24 + $0x58] sm:$0xff] }
 0x11e   : > { %v685_v56 = vpop.f32.mrb[14].mxu0  ;;  %949 = vadd.xlane.f32.xlu1 %v948_v62  ;;  %v1091_v0 = vpop.xlane.xlu0 %1090 }
 0x11f   : > { %v686_v59 = vadd.f32 %v1869_v34, %v685_v56  ;;  %v1431_v61 = vpop.f32.mrb[15].mxu0  ;;  %v951_v63 = vsel %vm932_vm3, %v925_v54, 0.0  ;;  %v994_v3 = vmul.f32 %v981_v58, %v888_v60  ;;  %v1087_v58 = vmul.f32 %v1074_v51, %v1061_v49 }
 0x120   : > { %952 = vadd.xlane.f32.xlu0 %v951_v63  ;;  %v892_v5 = vpop.f32.mrb[20].mxu1 }
 0x121   : > { %v893_v11 = vadd.f32 %v1853_v23, %v892_v5  ;;  %v1025_v12 = vsel %vm932_vm3, %v994_v3, 0.0  ;;  %v1483_v13 = vpop.f32.mrb[21].mxu1  ;;  %v926_v14 = vmul.f32 %v913_v1, %v686_v59  ;;  %v1088_v59 = vmul.f32 %v1075_v53, %v1062_v52  ;;  %v1094_v1 = vpop.xlane.xlu1 %1093 }
 0x122   : > { %v690_v4 = vpop.f32.mrb[16].mxu0  ;;  %1023 = vadd.xlane.f32.xlu1 %v1022_v2  ;;  %v1122_v62 = vsel %vm932_vm3, %v1087_v58, 0.0 }
 0x123   : > { %v691_v8 = vadd.f32 %v1869_v34, %v690_v4  ;;  %v1434_v10 = vpop.f32.mrb[17].mxu0  ;;  %v995_v16 = vmul.f32 %v982_v7, %v893_v11  ;;  %v954_v22 = vsel %vm932_vm3, %v926_v14, 0.0  ;;  %v1125_v63 = vsel %vm932_vm3, %v1088_v59, 0.0 }
 0x124   : > { %1026 = vadd.xlane.f32.xlu0 %v1025_v12  ;;  %v897_v18 = vpop.f32.mrb[22].mxu1  ;;  %v1958_v12 = vstv %s514_s16  ;;  %v1960_v14 = vstv %s1325_s19 }
 0x125   : > { %v927_v15 = vmul.f32 %v914_v6, %v691_v8  ;;  %v898_v21 = vadd.f32 %v1853_v23, %v897_v18  ;;  %v1486_v25 = vpop.f32.mrb[23].mxu1  ;;  %v1028_v27 = vsel %vm932_vm3, %v995_v16, 0.0  ;;  %v1100_v3 = vpop.xlane.xlu1 %1099 }
 0x126   : > { %v695_v17 = vpop.f32.mrb[18].mxu0  ;;  %955 = vadd.xlane.f32.xlu1 %v954_v22  ;;  %v1130_v25 = vmul.f32 %v1958_v12, %v1094_v1 }
 0x127   : > { %v696_v20 = vadd.f32 %v1869_v34, %v695_v17  ;;  %v1437_v9 = vpop.f32.mrb[19].mxu0  ;;  %v957_v24 = vsel %vm932_vm3, %v927_v15, 0.0  ;;  %v996_v28 = vmul.f32 %v983_v19, %v898_v21  ;;  %v1129_v17 = vmul.f32 %v1958_v12, %v1091_v0 }
 0x128   : > { %958 = vadd.xlane.f32.xlu0 %v957_v24  ;;  %v902_v30 = vpop.f32.mrb[24].mxu1 }
 0x129   : > { %v1031_v36 = vsel %vm932_vm3, %v996_v28, 0.0  ;;  %v903_v37 = vadd.f32 %v1853_v23, %v902_v30  ;;  %v1489_v38 = vpop.f32.mrb[25].mxu1  ;;  %v928_v39 = vmul.f32 %v915_v26, %v696_v20  ;;  %v917_v23 = vld [vmem:[%s1864_s13 + $0x58] sm:$0xff]  ;;  %v1106_v5 = vpop.xlane.xlu1 %1105 }
 0x12a   : > { %v700_v29 = vpop.f32.mrb[20].mxu0  ;;  %1029 = vadd.xlane.f32.xlu1 %v1028_v27 }
 0x12b   : > { %v701_v33 = vadd.f32 %v1869_v34, %v700_v29  ;;  %v1440_v35 = vpop.f32.mrb[21].mxu0  ;;  %v997_v41 = vmul.f32 %v984_v32, %v903_v37  ;;  %v960_v45 = vsel %vm932_vm3, %v928_v39, 0.0  ;;  %v1132_v39 = vmul.f32 %v1958_v12, %v1100_v3 }
 0x12c   : > { %1032 = vadd.xlane.f32.xlu0 %v1031_v36 }
 0x12d   : > { %v929_v40 = vmul.f32 %v916_v31, %v701_v33  ;;  %v1034_v47 = vsel %vm932_vm3, %v997_v41, 0.0  ;;  %v1952_v7 = vpop.xlane.xlu1 %1111 }
 0x12e   : > { %v705_v42 = vpop.f32.mrb[22].mxu0  ;;  %961 = vadd.xlane.f32.xlu1 %v960_v45 }
 0x12f   : > { %v706_v43 = vadd.f32 %v1869_v34, %v705_v42  ;;  %v1443_v44 = vpop.f32.mrb[23].mxu0  ;;  %v963_v46 = vsel %vm932_vm3, %v929_v40, 0.0 }
 0x130   : > { %964 = vadd.xlane.f32.xlu0 %v963_v46 }
 0x131   : > { %v930_v56 = vmul.f32 %v917_v23, %v706_v43  ;;  %v1956_v10 = vpop.xlane.xlu1 %1117 }
 0x132   : > { %v710_v50 = vpop.f32.mrb[24].mxu0  ;;  %1035 = vadd.xlane.f32.xlu1 %v1034_v47 }
 0x133   : > { %v711_v54 = vadd.f32 %v1869_v34, %v710_v50  ;;  %v1446_v55 = vpop.f32.mrb[25].mxu0  ;;  %v966_v60 = vsel %vm932_vm3, %v930_v56, 0.0  ;;  %v1097_v34 = vpop.xlane.xlu0 %1096  ;;  %v1134_v50 = vmul.f32 %v1958_v12, %v1106_v5 }
 0x134   : > { %v1131_v31 = vmul.f32 %v1958_v12, %v1097_v34 }
 0x135   : > { %v931_v57 = vmul.f32 %v918_v48, %v711_v54 }
 0x136   : > { %967 = vadd.xlane.f32.xlu1 %v966_v60 }
 0x137   : > { %v969_v61 = vsel %vm932_vm3, %v931_v57, 0.0  ;;  %v1103_v2 = vpop.xlane.xlu0 %1102 }
 0x138   : > { %970 = vadd.xlane.f32.xlu0 %v969_v61  ;;  %v1133_v40 = vmul.f32 %v1958_v12, %v1103_v2 }
 0x13a   : > { %1123 = vadd.xlane.f32.xlu1 %v1122_v62  ;;  %v1136_v62 = vmul.f32 %v1958_v12, %v1952_v7 }
 0x13b   : > { %v1109_v4 = vpop.xlane.xlu0 %1108 }
 0x13c   : > { %1126 = vadd.xlane.f32.xlu0 %v1125_v63  ;;  %v1135_v51 = vmul.f32 %v1958_v12, %v1109_v4 }
 0x13f   : > { %v1950_v6 = vpop.xlane.xlu0 %1114 }
 0x140   : > { %v1137_v63 = vmul.f32 %v1958_v12, %v1950_v6  ;;  %v1138_v6 = vmul.f32 %v1958_v12, %v1956_v10 }
 0x143   : > { %v1954_v8 = vpop.xlane.xlu0 %1120 }
 0x18b   : > { %v1000_v13 = vpop.xlane.xlu1 %999 }
 0x18f   : > { %v1003_v11 = vpop.xlane.xlu0 %1002 }
 0x193   : > { %v1006_v19 = vpop.xlane.xlu1 %1005 }
 0x195   : > { %v935_v15 = vpop.xlane.xlu0 %934 }
 0x196   : > { %v1037_v16 = vadd.f32 %v1000_v13, %v935_v15  ;;  %v1139_v15 = vmul.f32 %v1958_v12, %v1954_v8 }
 0x198   : > { %v1143_v18 = vmul.f32 %v1960_v14, %v1037_v16 }
 0x199   : > { %v1009_v20 = vpop.xlane.xlu0 %1008 }
 0x19a   : > { %v1156_v21 = vadd.f32 %v1143_v18, %v1129_v17 }
 0x19b   : > { %v1012_v9 = vpop.xlane.xlu1 %1011 }
 0x19c   : > { %1170 = vst.msk [vmem:[%s1968_s22] sm:$0xff] %vm1169_vm4, %v1156_v21 }
 0x19d   : > { %v938_v22 = vpop.xlane.xlu0 %937 }
 0x19e   : > { %v1038_v24 = vadd.f32 %v1003_v11, %v938_v22 }
 0x19f   : > { %v941_v27 = vpop.xlane.xlu1 %940 }
 0x1a0   : > { %v1144_v26 = vmul.f32 %v1960_v14, %v1038_v24  ;;  %v1039_v30 = vadd.f32 %v1006_v19, %v941_v27 }
 0x1a1   : > { %v1015_v28 = vpop.xlane.xlu0 %1014 }
 0x1a2   : > { %v1157_v29 = vadd.f32 %v1144_v26, %v1130_v25  ;;  %v1145_v32 = vmul.f32 %v1960_v14, %v1039_v30 }
 0x1a3   : > { %v944_v33 = vpop.xlane.xlu1 %943 }
 0x1a4   : > { %1171 = vst.msk [vmem:[%s1968_s22 + $0x8] sm:$0xff] %vm1169_vm4, %v1157_v29  ;;  %v1158_v36 = vadd.f32 %v1145_v32, %v1131_v31  ;;  %v1040_v37 = vadd.f32 %v1009_v20, %v944_v33 }
 0x1a5   : > { %v947_v35 = vpop.xlane.xlu0 %946 }
 0x1a6   : > { %v1041_v38 = vadd.f32 %v1012_v9, %v947_v35  ;;  %1172 = vst.msk [vmem:[%s1968_s22 + $0x10] sm:$0xff] %vm1169_vm4, %v1158_v36  ;;  %v1146_v41 = vmul.f32 %v1960_v14, %v1040_v37 }
 0x1a7   : > { %v1018_v43 = vpop.xlane.xlu1 %1017 }
 0x1a8   : > { %v1147_v42 = vmul.f32 %v1960_v14, %v1041_v38  ;;  %v1159_v45 = vadd.f32 %v1146_v41, %v1132_v39 }
 0x1a9   : > { %v1021_v44 = vpop.xlane.xlu0 %1020 }
 0x1aa   : > { %v1160_v46 = vadd.f32 %v1147_v42, %v1133_v40  ;;  %1173 = vst.msk [vmem:[%s1968_s22 + $0x18] sm:$0xff] %vm1169_vm4, %v1159_v45 }
 0x1ab   : > { %v950_v23 = vpop.xlane.xlu1 %949 }
 0x1ac   : > { %1174 = vst.msk [vmem:[%s1968_s22 + $0x20] sm:$0xff] %vm1169_vm4, %v1160_v46  ;;  %v1042_v48 = vadd.f32 %v1015_v28, %v950_v23 }
 0x1ad   : > { %v953_v47 = vpop.xlane.xlu0 %952 }
 0x1ae   : > { %v1043_v49 = vadd.f32 %v1018_v43, %v953_v47  ;;  %v1148_v52 = vmul.f32 %v1960_v14, %v1042_v48 }
 0x1af   : > { %v1024_v54 = vpop.xlane.xlu1 %1023 }
 0x1b0   : > { %v1149_v53 = vmul.f32 %v1960_v14, %v1043_v49  ;;  %v1161_v56 = vadd.f32 %v1148_v52, %v1134_v50 }
 0x1b1   : > { %v1027_v55 = vpop.xlane.xlu0 %1026 }
 0x1b2   : > { %v1162_v57 = vadd.f32 %v1149_v53, %v1135_v51  ;;  %1175 = vst.msk [vmem:[%s1968_s22 + $0x28] sm:$0xff] %vm1169_vm4, %v1161_v56 }
 0x1b3   : > { %v956_v58 = vpop.xlane.xlu1 %955 }
 0x1b4   : > { %1176 = vst.msk [vmem:[%s1968_s22 + $0x30] sm:$0xff] %vm1169_vm4, %v1162_v57  ;;  %v1044_v60 = vadd.f32 %v1021_v44, %v956_v58 }
 0x1b5   : > { %v959_v59 = vpop.xlane.xlu0 %958 }
 0x1b6   : > { %v1045_v61 = vadd.f32 %v1024_v54, %v959_v59  ;;  %v1150_v0 = vmul.f32 %v1960_v14, %v1044_v60 }
 0x1b7   : > { %v1030_v1 = vpop.xlane.xlu1 %1029 }
 0x1b8   : > { %v1151_v34 = vmul.f32 %v1960_v14, %v1045_v61  ;;  %v1163_v3 = vadd.f32 %v1150_v0, %v1136_v62 }
 0x1b9   : > { %v1033_v2 = vpop.xlane.xlu0 %1032 }
 0x1ba   : > { %v1164_v4 = vadd.f32 %v1151_v34, %v1137_v63  ;;  %1177 = vst.msk [vmem:[%s1968_s22 + $0x38] sm:$0xff] %vm1169_vm4, %v1163_v3 }
 0x1bb   : > { %v962_v5 = vpop.xlane.xlu1 %961 }
 0x1bc   : > { %1178 = vst.msk [vmem:[%s1968_s22 + $0x40] sm:$0xff] %vm1169_vm4, %v1164_v4  ;;  %v1046_v7 = vadd.f32 %v1027_v55, %v962_v5 }
 0x1bd   : > { %v965_v11 = vpop.xlane.xlu0 %964 }
 0x1be   : > { %v1047_v13 = vadd.f32 %v1030_v1, %v965_v11  ;;  %v1152_v16 = vmul.f32 %v1960_v14, %v1046_v7 }
 0x1bf   : > { %v1036_v18 = vpop.xlane.xlu1 %1035 }
 0x1c0   : > { %v1153_v17 = vmul.f32 %v1960_v14, %v1047_v13  ;;  %v1165_v19 = vadd.f32 %v1152_v16, %v1138_v6 }
 0x1c2   : > { %v1166_v20 = vadd.f32 %v1153_v17, %v1139_v15  ;;  %1179 = vst.msk [vmem:[%s1968_s22 + $0x48] sm:$0xff] %vm1169_vm4, %v1165_v19 }
 0x1c3   : > { %v968_v21 = vpop.xlane.xlu1 %967 }
 0x1c4   : > { %1180 = vst.msk [vmem:[%s1968_s22 + $0x50] sm:$0xff] %vm1169_vm4, %v1166_v20  ;;  %v1048_v22 = vadd.f32 %v1033_v2, %v968_v21 }
 0x1c5   : > { %v971_v9 = vpop.xlane.xlu0 %970 }
 0x1c6   : > { %v1049_v10 = vadd.f32 %v1036_v18, %v971_v9  ;;  %v1154_v8 = vmul.f32 %v1960_v14, %v1048_v22 }
 0x1c7   : > { %v1124_v24 = vpop.xlane.xlu1 %1123 }
 0x1c8   : > { %v1155_v26 = vmul.f32 %v1960_v14, %v1049_v10  ;;  %v1140_v27 = vmul.f32 %v1958_v12, %v1124_v24 }
 0x1c9   : > { %v1127_v25 = vpop.xlane.xlu0 %1126 }
 0x1ca   : > { %v1141_v28 = vmul.f32 %v1958_v12, %v1127_v25  ;;  %v1167_v29 = vadd.f32 %v1154_v8, %v1140_v27 }
 0x1cc   : > { %v1168_v30 = vadd.f32 %v1155_v26, %v1141_v28  ;;  %1181 = vst.msk [vmem:[%s1968_s22 + $0x58] sm:$0xff] %vm1169_vm4, %v1167_v29 }
 0x1ce   : > { %1182 = vst.msk [vmem:[%s1968_s22 + $0x60] sm:$0xff] %vm1169_vm4, %v1168_v30 }
 0x1cf PF: > { %s22_s17 = sadd.s32 1, %s1552_s17  }
 0x1d0   : > { %p19_p1 = scmp.ge.s32.totalorder %s22_s17, 4  }
 0x1d2   :  { %21 = sbr.rel (!%p19_p1) target bundleno = 1 (0x1), region = 114 }
 0x1d9   :  { %1205 = vsyncpa [#allocation3], 1 }
 0x1da   :  { %1207 = vsyncpa [#allocation3 + $0x1], 1 }

</bundles_post_ra>
